<compile_context>
chip_gen: v7x
topology: tpu7x:2x2x1
jax: 0.10.0
libtpu: 0.0.40
codegen_flags: <defaults>
</compile_context>

<pallas_src>
import jax
import jax.numpy as jnp
from jax.experimental import pallas as pl
from jax.experimental.pallas import tpu as pltpu

_CONFIDENCE = 50.0


def _make_cw_kernel(n_rows, tb):
    """Builds the per-tile kernel with N and the batch tile size baked in."""

    def kernel(x_ref, t_ref, o_ref):
        # x_ref: (tb, C) logits tile (native dtype), t_ref: (tb, 1) i32 labels,
        # o_ref: (1, 1) f32 per-block partial sum in SMEM.
        i = pl.program_id(0)

        x = x_ref[...].astype(jnp.float32)                     # upcast in VMEM
        t = t_ref[...]                                         # (tb, 1) i32

        cls = jax.lax.broadcasted_iota(jnp.int32, x.shape, 1)  # lane (class) ids
        is_true = cls == t                                     # one-hot via select

        # Bit-identical to mask*x and (1-mask)*x from the reference.
        correct = jnp.sum(jnp.where(is_true, x, 0.0), axis=1, keepdims=True)  # (tb,1)
        wrong = jnp.max(jnp.where(is_true, 0.0, x), axis=1, keepdims=True)    # (tb,1)

        hinge = jnp.maximum(correct - wrong + _CONFIDENCE, 0.0)               # relu

        # Mask rows past N (last partial tile) BEFORE the sum.  jnp.where is a
        # select, so even NaN garbage in padded rows cannot leak through.
        row = jax.lax.broadcasted_iota(jnp.int32, hinge.shape, 0) + i * tb
        hinge = jnp.where(row < n_rows, hinge, 0.0)

        o_ref[0, 0] = jnp.sum(hinge)                           # positive partial

    return kernel


def carlini_wagner_loss(x, target, *, tb=None,
                        vmem_tile_budget_bytes=20 * 1024 * 1024):
    """x: (N, C) logits (f32/bf16), target: (N,) int labels. Returns f32 scalar."""
    N, C = x.shape
    itemsize = jnp.dtype(x.dtype).itemsize

    if tb is None:
        # 2 inputs x 2 pipeline buffers of the (tb, C) / (tb, 1) tiles.
        per_row = 2 * 2 * (C * itemsize + 4)
        tb = (vmem_tile_budget_bytes // per_row) // 8 * 8
        tb = int(max(8, min(2048, tb)))
    if tb >= N:
        tb = N                      # single block == full batch dim (any N ok)
    else:
        tb = int(max(8, (tb // 8) * 8))

    grid = pl.cdiv(N, tb)
    t2d = target.astype(jnp.int32).reshape(N, 1)

    partials = pl.pallas_call(
        _make_cw_kernel(N, tb),
        out_shape=jax.ShapeDtypeStruct((grid, 1), jnp.float32),
        grid_spec=pltpu.PrefetchScalarGridSpec(
            num_scalar_prefetch=0,
            grid=(grid,),
            in_specs=[
                pl.BlockSpec((tb, C), lambda i: (i, 0)),
                pl.BlockSpec((tb, 1), lambda i: (i, 0)),
            ],
            out_specs=pl.BlockSpec(
                (1, 1), lambda i: (i, 0), memory_space=pltpu.SMEM
            ),
        ),
        compiler_params=pltpu.CompilerParams(
            dimension_semantics=("parallel",),        # independent blocks -> both TCs on v7x
            vmem_limit_bytes=32 * 1024 * 1024,        # tiles budgeted well under this
        ),
    )(x, t2d)

    # Tiny wrapper-side reduction of per-block partials, then negate.
    return -jnp.sum(partials)


def _cw_loss_ref(x, target):
    xf = x.astype(jnp.float32)
    C = x.shape[1]
    mask = jax.nn.one_hot(target, C, dtype=jnp.float32)
    correct = jnp.sum(mask * xf, axis=1)
    wrong = jnp.max((1.0 - mask) * xf, axis=1)
    return -jnp.sum(jax.nn.relu(correct - wrong + _CONFIDENCE))


if __name__ == "__main__":
    key = jax.random.PRNGKey(0)
    k1, k2, k3, k4 = jax.random.split(key, 4)

    # Case 1: aligned shapes, f32, auto tile size (single full-batch block).
    N, C = 16, 32
    x = jax.random.normal(k1, (N, C), dtype=jnp.float32) * 5.0
    target = jax.random.randint(k2, (N,), 0, C, dtype=jnp.int32)
    loss = jax.block_until_ready(carlini_wagner_loss(x, target))
    ref = _cw_loss_ref(x, target)
    assert jnp.allclose(loss, ref, rtol=1e-5, atol=1e-4), (loss, ref)

    # Case 2: ragged N (partial last tile) + C not a multiple of 128, negative-
    # shifted logits, small forced tile so the grid/row-mask path is exercised.
    N2, C2 = 10, 20
    x2 = jax.random.normal(k3, (N2, C2), dtype=jnp.float32) * 5.0 - 3.0
    target2 = jax.random.randint(k4, (N2,), 0, C2, dtype=jnp.int32)
    loss2 = jax.block_until_ready(carlini_wagner_loss(x2, target2, tb=8))
    ref2 = _cw_loss_ref(x2, target2)
    assert jnp.allclose(loss2, ref2, rtol=1e-5, atol=1e-4), (loss2, ref2)

    # Case 3: bf16 logits streamed natively, upcast inside the kernel.
    x3 = (jax.random.normal(k1, (N, C), dtype=jnp.float32) * 5.0).astype(jnp.bfloat16)
    loss3 = jax.block_until_ready(carlini_wagner_loss(x3, target))
    ref3 = _cw_loss_ref(x3, target)
    assert jnp.allclose(loss3, ref3, rtol=1e-5, atol=1e-3), (loss3, ref3)

    # Case 4: multi-block path with auto tile sizing (grid > 1), i64-style labels.
    N4, C4 = 4096, 128
    x4 = jax.random.normal(k3, (N4, C4), dtype=jnp.bfloat16)
    target4 = jax.random.randint(k4, (N4,), 0, C4, dtype=jnp.int32)
    loss4 = jax.block_until_ready(carlini_wagner_loss(x4, target4, tb=1024))
    ref4 = _cw_loss_ref(x4, target4)
    assert jnp.allclose(loss4, ref4, rtol=1e-5, atol=1e-2), (loss4, ref4)

    print("KERNEL_OK")
</pallas_src>

<mosaic_0001>
module attributes {stable_mosaic.version = 11 : i64} {
  func.func @kernel(%arg0: i32, %arg1: memref<16x32xf32, #tpu.memory_space<vmem>>, %arg2: memref<16x1xi32, #tpu.memory_space<vmem>>, %arg3: memref<1x1xf32, #tpu.memory_space<smem>>) attributes {dimension_semantics = [#tpu.dimension_semantics<parallel>], iteration_bounds = array<i64: 1>, scalar_prefetch = 0 : i64, scratch_operands = 0 : i64, tpu.core_type = #tpu.core_type<tc>, window_params = [{transform_indices = @transform_0, window_bounds = array<i64: 16, 32>}, {transform_indices = @transform_1, window_bounds = array<i64: 16, 1>}, {transform_indices = @transform_2, window_bounds = array<i64: 1, 1>}]} {
    %c0 = arith.constant 0 : index
    %c0_0 = arith.constant 0 : index
    %0 = vector.load %arg1[%c0, %c0_0] : memref<16x32xf32, #tpu.memory_space<vmem>>, vector<16x32xf32>
    %c0_1 = arith.constant 0 : index
    %c0_2 = arith.constant 0 : index
    %1 = vector.load %arg2[%c0_1, %c0_2] : memref<16x1xi32, #tpu.memory_space<vmem>>, vector<16x1xi32>
    %2 = tpu.iota {dimensions = array<i32: 1>} : vector<16x32xi32>
    %3 = vector.broadcast %1 : vector<16x1xi32> to vector<16x32xi32>
    %4 = arith.cmpi eq, %2, %3 : vector<16x32xi32>
    %cst = arith.constant 0.000000e+00 : f32
    %5 = vector.broadcast %cst : f32 to vector<16x32xf32>
    %6 = arith.select %4, %0, %5 : vector<16x32xi1>, vector<16x32xf32>
    %cst_3 = arith.constant dense<0.000000e+00> : vector<16xf32>
    %7 = vector.multi_reduction <add>, %6, %cst_3 [1] : vector<16x32xf32> to vector<16xf32>
    %8 = vector.shape_cast %7 : vector<16xf32> to vector<16x1xf32>
    %cst_4 = arith.constant 0.000000e+00 : f32
    %9 = vector.broadcast %cst_4 : f32 to vector<16x32xf32>
    %10 = arith.select %4, %9, %0 : vector<16x32xi1>, vector<16x32xf32>
    %cst_5 = arith.constant dense<0xFF800000> : vector<16xf32>
    %11 = vector.multi_reduction <maximumf>, %10, %cst_5 [1] : vector<16x32xf32> to vector<16xf32>
    %12 = vector.shape_cast %11 : vector<16xf32> to vector<16x1xf32>
    %13 = arith.subf %8, %12 : vector<16x1xf32>
    %cst_6 = arith.constant 5.000000e+01 : f32
    %14 = vector.broadcast %cst_6 : f32 to vector<16x1xf32>
    %15 = arith.addf %13, %14 : vector<16x1xf32>
    %cst_7 = arith.constant 0.000000e+00 : f32
    %16 = vector.broadcast %cst_7 : f32 to vector<16x1xf32>
    %17 = arith.maximumf %15, %16 : vector<16x1xf32>
    %18 = tpu.iota {dimensions = array<i32: 0>} : vector<16x1xi32>
    %c16_i32 = arith.constant 16 : i32
    %19 = arith.muli %arg0, %c16_i32 : i32
    %20 = vector.broadcast %19 : i32 to vector<16x1xi32>
    %21 = arith.addi %18, %20 : vector<16x1xi32>
    %c16_i32_8 = arith.constant 16 : i32
    %22 = vector.broadcast %c16_i32_8 : i32 to vector<16x1xi32>
    %23 = arith.cmpi slt, %21, %22 : vector<16x1xi32>
    %cst_9 = arith.constant 0.000000e+00 : f32
    %24 = vector.broadcast %cst_9 : f32 to vector<16x1xf32>
    %25 = arith.select %23, %17, %24 : vector<16x1xi1>, vector<16x1xf32>
    %26 = vector.shape_cast %25 : vector<16x1xf32> to vector<1x16x1xf32>
    %cst_10 = arith.constant dense<0.000000e+00> : vector<1xf32>
    %27 = vector.multi_reduction <add>, %26, %cst_10 [1, 2] : vector<1x16x1xf32> to vector<1xf32>
    %28 = vector.shape_cast %27 : vector<1xf32> to vector<1x1x1xf32>
    %29 = vector.extract %28[0, 0, 0] : f32 from vector<1x1x1xf32>
    %c0_11 = arith.constant 0 : index
    %c0_12 = arith.constant 0 : index
    %30 = memref.load %arg3[%c0_11, %c0_12] : memref<1x1xf32, #tpu.memory_space<smem>>
    memref.store %29, %arg3[%c0_11, %c0_12] : memref<1x1xf32, #tpu.memory_space<smem>>
    return
  }
  func.func @transform_0(%arg0: i32) -> (i32, i32) {
    %c0_i32 = arith.constant 0 : i32
    %c0_i32_0 = arith.constant 0 : i32
    return %arg0, %c0_i32 : i32, i32
  }
  func.func @transform_1(%arg0: i32) -> (i32, i32) {
    %c0_i32 = arith.constant 0 : i32
    %c0_i32_0 = arith.constant 0 : i32
    return %arg0, %c0_i32 : i32, i32
  }
  func.func @transform_2(%arg0: i32) -> (i32, i32) {
    %c0_i32 = arith.constant 0 : i32
    %c0_i32_0 = arith.constant 0 : i32
    return %arg0, %c0_i32 : i32, i32
  }
}

</mosaic_0001>

<bundles_post_ra>
// kernel: tpu_custom_call.1
= control target key start
LH: loop header
LB: loop body
LE: loop exit
PB: predicated region body
PF: predicated region fallthrough
CT: control target
= control target key end

     0   :  { %s146_s0 = inlined_call_operand.vmem [shape: f32[16,32], index: 0, kind: input, shape index: {}]   ;;  %s147_s1 = inlined_call_operand.vmem [shape: s32[16,1], index: 1, kind: input, shape index: {}]   ;;  %s148_s2 = inlined_call_operand.hbm [shape: f32[1,1], index: 2, kind: output, shape index: {}]  }
   0x1   :  { %v14_v0 = vld [vmem:[%s147_s1] sm:$0xff] }
   0x2   :  { %7 = vsyncpa [#allocation3], 0  ;;  %v105_v1 = vmov 0   ;;  %v15_v2 = vld [vmem:[%s147_s1 + $0x8] sm:$0xff]  ;;  %v16_v3 = vlaneseq  ;;  %v12_v5 = vld [vmem:[%s146_s0] sm:$0xff]  ;;  %vm28_vm0 = vcmask 261120  }
   0x3   :  { %92 = vset.pattern.permute.xlu0 %v105_v1  ;;  %v13_v11 = vld [vmem:[%s146_s0 + $0x8] sm:$0xff]  ;;  %vm60_vm3 = vcmask 7168   ;;  %s93_s18 = scalar_lea.hbm %s148_s2, 16 }
   0x4   :  { %19 = vperm.xlu0 %92, %v14_v0   ;;  %v17_v4 = vand.u32 127, %v16_v3  ;;  %p94_p0 = scmp.ne.s32.totalorder %s148_s2, %s93_s18  ;;  %p97_p1 = scmp.lt.u32.totalorder %s93_s18, %s148_s2 }
   0x6   :  { %p99_p2 = pnand %p97_p1, %p94_p0 }
   0x8   :  { %22 = vperm.xlu0 %92, %v15_v2  }
  0x83   :  { %v20_v6 = vpop.permute.xlu0 %19 }
  0x84   :  { %vm24_vm1 = vcmp.eq.s32.totalorder %v17_v4, %v20_v6 }
  0x85   :  { %v35_v7 = vsel %vm24_vm1, 0.0, %v12_v5  ;;  %v26_v8 = vsel %vm24_vm1, %v12_v5, 0.0 }
  0x86   :  { %v37_v9 = vsel %vm28_vm0, %v35_v7, -inf  ;;  %v29_v10 = vsel %vm28_vm0, %v26_v8, 0.0 }
  0x87   :  { %v23_v12 = vpop.permute.xlu0 %22  ;;  %38 = vmax.xlane.f32.xlu0 %v37_v9  ;;  %30 = vadd.xlane.f32.xlu1 %v29_v10 }
  0x88   :  { %vm25_vm2 = vcmp.eq.s32.totalorder %v17_v4, %v23_v12 }
  0x89   :  { %v27_v13 = vsel %vm25_vm2, %v13_v11, 0.0  ;;  %v36_v15 = vsel %vm25_vm2, 0.0, %v13_v11 }
  0x8a   :  { %v32_v14 = vsel %vm28_vm0, %v27_v13, 0.0  ;;  %v40_v16 = vsel %vm28_vm0, %v36_v15, -inf }
  0x8b   :  { %33 = vadd.xlane.f32.xlu1 %v32_v14 }
  0x8f   :  { %41 = vmax.xlane.f32.xlu1 %v40_v16 }
 0x114   :  { %v39_v17 = vpop.xlane.xlu0 %38  ;;  %v31_v18 = vpop.xlane.xlu1 %30 }
 0x115   :  { %v43_v19 = vsub.f32 %v31_v18, %v39_v17 }
 0x117   :  { %v45_v21 = vadd.f32 50.0, %v43_v19 }
 0x118   :  { %v34_v20 = vpop.xlane.xlu1 %33 }
 0x119   :  { %v47_v24 = vmax.f32 %v45_v21, 0.0 }
 0x11b   :  { %v61_v27 = vsel %vm60_vm3, %v47_v24, 0.0 }
 0x11c   :  { %v42_v22 = vpop.xlane.xlu1 %41 }
 0x11d   :  { %v44_v23 = vsub.f32 %v34_v20, %v42_v22 }
 0x11f   :  { %v46_v25 = vadd.f32 50.0, %v44_v23 }
 0x121   :  { %v48_v26 = vmax.f32 %v46_v25, 0.0 }
 0x123   :  { %v62_v28 = vsel %vm60_vm3, %v48_v26, 0.0 }
 0x124   :  { %v63_v29 = vadd.f32 %v62_v28, %v61_v27 }
 0x126   :  { %64 = vadd.xlane.f32.xlu1 %v63_v29 }
 0x1b3   :  { %v65_v30 = vpop.xlane.xlu1 %64 }
 0x1b4   :  { %v66_v31 = vrot.slane %v65_v30, 4 }
 0x1b6   :  { %v67_v32 = vadd.f32 %v66_v31, %v65_v30 }
 0x1b8   :  { %v68_v33 = vrot.slane %v67_v32, 2 }
 0x1ba   :  { %v69_v34 = vadd.f32 %v68_v33, %v67_v32 }
 0x1bc   :  { %v70_v35 = vrot.slane %v69_v34, 1 }
 0x1be   :  { %v71_v36 = vadd.f32 %v70_v35, %v69_v34 }
 0x1c0   :  { %88 = vpush %v71_v36 }
 0x1f1   :  { %s89_s0 = spop %88 }
 0x1f2   :  { %74 = sst [smem:[#allocation2]] %s89_s0 }
 0x1f3   :  { %102 = shalt.err (!%p99_p2)
}
 0x1f4   :  { %s106_s23 = smov [#allocation2]  }
 0x1f5   :  { %82 = dma.smem_to_hbm %s106_s23, 16, %s148_s2, [#allocation3]  }
 0x1f6   :  { %103 = dma.done.wait [#allocation3], 16  }
 0x1f7   :  { %104 = vsyncadd [#allocation3], 4294967280 }
 0x1f8   :  { %86 = sfence }
 0x1f9   :  { %87 = vsyncpa [#allocation3], 1 }

</bundles_post_ra>
